<compile_context>
chip_gen: v7x
topology: tpu7x:2x2x1
jax: 0.10.0
libtpu: 0.0.40
codegen_flags: <defaults>
</compile_context>

<pallas_src>
import jax
import jax.numpy as jnp
from jax import lax
from jax.experimental import pallas as pl
from jax.experimental.pallas import tpu as pltpu


def _discriminator_kernel(h_ref, x_ref, out_ref):
    # out[j, 0] = sum_k x[j, k] * h[k]  — streamed GEMV on the MXU.  The
    # (TILE_N, H) x tile is the streamed LHS operand; h stays resident in VMEM.
    out_ref[...] = jnp.dot(
        x_ref[...], h_ref[...],
        preferred_element_type=jnp.float32,
        precision=lax.Precision.HIGHEST,
    ).astype(out_ref.dtype)


def _pick_tile_n(n, h, itemsize, target_block_bytes=4 << 20):
    """x-tile rows: ~4 MiB of HBM traffic per step, multiple of 128, >=2 blocks."""
    if n <= 512:
        # Small problem: single block (block shape == array shape is exempt
        # from the (8, 128) tiling rule).
        return n
    tile = max(128, (target_block_bytes // (h * itemsize)) // 128 * 128)
    # Keep at least 2 blocks so both v7x TensorCores get balanced work.
    half = (((n + 1) // 2) + 127) // 128 * 128
    return min(tile, half)


def discriminator_forward(x, summary, weight, *, tile_n=None):
    """x: (N, H), summary: (H,), weight: (H, H) -> (N,)"""
    n, hdim = x.shape
    assert summary.shape == (hdim,)
    assert weight.shape == (hdim, hdim)

    # Hoisted h = summary @ W (tiny; full f32 precision for parity with torch).
    h_col = jnp.dot(summary, weight,
                    preferred_element_type=jnp.float32,
                    precision=lax.Precision.HIGHEST).astype(x.dtype)
    h_col = h_col.reshape(hdim, 1)

    itemsize = jnp.dtype(x.dtype).itemsize
    if tile_n is None:
        tile = _pick_tile_n(n, hdim, itemsize)
    else:
        tile = n if n <= tile_n else tile_n
    if tile != n:
        assert tile % 128 == 0, "tiled path requires tile_n % 128 == 0"
    grid = (pl.cdiv(n, tile),)

    # Bandwidth-dominated profile (the summary @ W matmul lives outside).
    cost = pl.CostEstimate(
        flops=2 * n * hdim,
        transcendentals=0,
        bytes_accessed=(n * hdim * itemsize      # x streamed once
                        + hdim * itemsize        # h vector
                        + n * itemsize),         # output
    )

    # Generation-aware VMEM limit: double-buffered x tile + h + out + headroom,
    # capped at 75% of physical VMEM (~48 MiB on v7x, ~96 MiB on v5e/v6e).
    try:
        vmem_cap = pltpu.get_tpu_info().vmem_capacity_bytes
    except Exception:
        vmem_cap = 64 << 20  # conservative (v7x) fallback
    vmem_need = 2 * (tile * hdim + hdim + tile) * itemsize + (4 << 20)
    vmem_limit = int(min(max(vmem_need, 32 << 20), vmem_cap * 3 // 4))

    out = pl.pallas_call(
        _discriminator_kernel,
        out_shape=jax.ShapeDtypeStruct((n, 1), x.dtype),
        grid_spec=pltpu.PrefetchScalarGridSpec(
            num_scalar_prefetch=0,
            grid=grid,
            in_specs=[
                pl.BlockSpec((hdim, 1), lambda i: (0, 0)),     # h (resident, tiny)
                pl.BlockSpec((tile, hdim), lambda i: (i, 0)),  # x (pipelined)
            ],
            out_specs=pl.BlockSpec((tile, 1), lambda i: (i, 0)),
        ),
        compiler_params=pltpu.CompilerParams(
            dimension_semantics=("parallel",),
            vmem_limit_bytes=vmem_limit),
        cost_estimate=cost,
    )(h_col, x)
    return out.reshape(n)


def init_discriminator_weight(key, hidden_dim, dtype=jnp.float32):
    # Replicates torch_geometric `uniform(size, tensor)`:
    #   bound = 1/sqrt(size); tensor.uniform_(-bound, bound)
    bound = 1.0 / jnp.sqrt(jnp.asarray(hidden_dim, dtype=jnp.float32))
    return jax.random.uniform(key, (hidden_dim, hidden_dim),
                              minval=-bound, maxval=bound, dtype=dtype)


def _reference(x, summary, weight):
    h = jnp.dot(summary, weight,
                preferred_element_type=jnp.float32,
                precision=lax.Precision.HIGHEST)
    return jnp.sum(x * h, axis=1)


if __name__ == "__main__":
    key = jax.random.PRNGKey(0)
    keys = jax.random.split(key, 9)

    # Case 1: tiny single-block shapes (hidden=32, N=8).
    h1, n1 = 32, 8
    w1 = init_discriminator_weight(keys[0], h1)
    x1 = jax.random.normal(keys[1], (n1, h1), dtype=jnp.float32)
    s1 = jax.random.normal(keys[2], (h1,), dtype=jnp.float32)
    out1 = discriminator_forward(x1, s1, w1)
    jax.block_until_ready(out1)
    ref1 = _reference(x1, s1, w1)
    assert out1.shape == (n1,)
    assert jnp.allclose(out1, ref1, atol=1e-4, rtol=1e-4), (out1, ref1)

    # Case 2: forced small tile -> exercises the pipelined multi-block path
    # (N=384 rows -> 3 tiles of 128, hidden=128).
    h2, n2 = 128, 384
    w2 = init_discriminator_weight(keys[3], h2)
    x2 = jax.random.normal(keys[4], (n2, h2), dtype=jnp.float32)
    s2 = jax.random.normal(keys[5], (h2,), dtype=jnp.float32)
    out2 = discriminator_forward(x2, s2, w2, tile_n=128)
    jax.block_until_ready(out2)
    ref2 = _reference(x2, s2, w2)
    assert out2.shape == (n2,)
    assert jnp.allclose(out2, ref2, atol=1e-4, rtol=1e-4), (out2, ref2)

    # Case 3: adaptive tile selection (N=1024, hidden=64 -> 2 blocks of 512).
    h3, n3 = 64, 1024
    w3 = init_discriminator_weight(keys[6], h3)
    x3 = jax.random.normal(keys[7], (n3, h3), dtype=jnp.float32)
    s3 = jax.random.normal(keys[8], (h3,), dtype=jnp.float32)
    out3 = discriminator_forward(x3, s3, w3)
    jax.block_until_ready(out3)
    ref3 = _reference(x3, s3, w3)
    assert out3.shape == (n3,)
    assert jnp.allclose(out3, ref3, atol=1e-4, rtol=1e-4), (out3, ref3)

    print("KERNEL_OK")
</pallas_src>

<mosaic_0001>
module attributes {stable_mosaic.version = 11 : i64} {
  func.func @_discriminator_kernel(%arg0: i32, %arg1: memref<32x1xf32, #tpu.memory_space<vmem>>, %arg2: memref<8x32xf32, #tpu.memory_space<vmem>>, %arg3: memref<8x1xf32, #tpu.memory_space<vmem>>) attributes {dimension_semantics = [#tpu.dimension_semantics<parallel>], iteration_bounds = array<i64: 1>, scalar_prefetch = 0 : i64, scratch_operands = 0 : i64, tpu.core_type = #tpu.core_type<tc>, window_params = [{pipeline_mode = #tpu.pipeline_mode<synchronous>, transform_indices = @transform_0, window_bounds = array<i64: 32, 1>}, {transform_indices = @transform_1, window_bounds = array<i64: 8, 32>}, {transform_indices = @transform_2, window_bounds = array<i64: 8, 1>}]} {
    %c0 = arith.constant 0 : index
    %c0_0 = arith.constant 0 : index
    %0 = vector.load %arg2[%c0, %c0_0] : memref<8x32xf32, #tpu.memory_space<vmem>>, vector<8x32xf32>
    %c0_1 = arith.constant 0 : index
    %c0_2 = arith.constant 0 : index
    %1 = vector.load %arg1[%c0_1, %c0_2] : memref<32x1xf32, #tpu.memory_space<vmem>>, vector<32x1xf32>
    %cst = arith.constant dense<0.000000e+00> : vector<8x1xf32>
    %2 = tpu.matmul %0, %1, %cst {dimension_numbers = #tpu.dot_dimension_numbers<[1], [0], [0], [1], [0, 0, 1, 1], [], []>, precision = #tpu.contract_precision<fp32>} : vector<8x32xf32>, vector<32x1xf32>, vector<8x1xf32> -> vector<8x1xf32>
    %c0_3 = arith.constant 0 : index
    %c0_4 = arith.constant 0 : index
    %3 = vector.load %arg3[%c0_3, %c0_4] : memref<8x1xf32, #tpu.memory_space<vmem>>, vector<8x1xf32>
    tpu.vector_store %arg3[%c0_3, %c0_4], %2 {strides = array<i32>} : memref<8x1xf32, #tpu.memory_space<vmem>>, vector<8x1xf32>,
    return
  }
  func.func @transform_0(%arg0: i32) -> (i32, i32) {
    %c0_i32 = arith.constant 0 : i32
    %c0_i32_0 = arith.constant 0 : i32
    %c0_i32_1 = arith.constant 0 : i32
    return %c0_i32, %c0_i32_0 : i32, i32
  }
  func.func @transform_1(%arg0: i32) -> (i32, i32) {
    %c0_i32 = arith.constant 0 : i32
    %c0_i32_0 = arith.constant 0 : i32
    return %arg0, %c0_i32 : i32, i32
  }
  func.func @transform_2(%arg0: i32) -> (i32, i32) {
    %c0_i32 = arith.constant 0 : i32
    %c0_i32_0 = arith.constant 0 : i32
    return %arg0, %c0_i32 : i32, i32
  }
}

</mosaic_0001>

<bundles_post_ra>
// kernel: tpu_custom_call.1
= control target key start
LH: loop header
LB: loop body
LE: loop exit
PB: predicated region body
PF: predicated region fallthrough
CT: control target
= control target key end

     0   :  { %vm16_vm0 = vcmask 261120   ;;  %v655_v0 = vmov 0.0|0.0   ;;  %vm656_vm1 = vmmov 0   ;;  %v657_v8 = vmov 0.0   ;;  %s710_s0 = inlined_call_operand.vmem [shape: f32[32,1], index: 0, kind: input, shape index: {}]   ;;  %s711_s1 = inlined_call_operand.vmem [shape: f32[8,32], index: 1, kind: input, shape index: {}]   ;;  %s712_s2 = inlined_call_operand.vmem [shape: f32[8,1], index: 2, kind: output, shape index: {}]  }
   0x1   :  { %607 = vmatprep.subr.bf16.mxu1 %v655_v0  ;;  %625 = vmatprep.subr.bf16.mxu0 %v655_v0  ;;  %v12_v1 = vld [vmem:[%s710_s0] sm:$0xff]  ;;  %v13_v2 = vld [vmem:[%s710_s0 + $0x8] sm:$0xff]  ;;  %v14_v3 = vld [vmem:[%s710_s0 + $0x10] sm:$0xff]  ;;  %vm505_vm2 = vcmask 7168  }
   0x2   :  { %v21_v4 = vand.u32 4294901760, %v12_v1  ;;  %v24_v5 = vand.u32 4294901760, %v13_v2  ;;  %v15_v6 = vld [vmem:[%s710_s0 + $0x18] sm:$0xff]  ;;  %v27_v7 = vand.u32 4294901760, %v14_v3  ;;  %549 = vmatprep.mubr.msk.f32.mxu1 %vm656_vm1, %v657_v8  ;;  %582 = vmatprep.mubr.msk.f32.mxu0 %vm656_vm1, %v657_v8  ;;  %v11_v9 = vld [vmem:[%s711_s1] sm:$0xff] }
   0x3   :  { %v30_v10 = vand.u32 4294901760, %v15_v6  ;;  %v18_v11 = vsel %vm16_vm0, %v11_v9, 0 }
   0x4   :  { %v608_v12 = vpack.c.bf16 %v24_v5, %v21_v4  ;;  %v101_v13 = vsub.f32 %v12_v1, %v21_v4  ;;  %v108_v14 = vsub.f32 %v13_v2, %v24_v5  ;;  %v115_v15 = vsub.f32 %v14_v3, %v27_v7 }
   0x5   :  { %v122_v16 = vsub.f32 %v15_v6, %v30_v10  ;;  %v89_v17 = vand.u32 4294901760, %v18_v11  ;;  %v611_v18 = vpack.c.bf16 %v30_v10, %v27_v7 }
   0x6   :  { %609 = vmatpush3.bf16.msra.mxu1 %v608_v12  ;;  %627 = vmatpush3.bf16.msra.mxu0 %v608_v12  ;;  %v102_v19 = vand.u32 4294901760, %v101_v13  ;;  %v109_v20 = vand.u32 4294901760, %v108_v14  ;;  %v116_v21 = vand.u32 4294901760, %v115_v15  ;;  %v620_v39 = vpack.c.bf16 %v108_v14, %v101_v13 }
   0x7   :  { %610 = vmatprep.subr.bf16.mxu1 %v655_v0  ;;  %628 = vmatprep.subr.bf16.mxu0 %v655_v0  ;;  %v90_v22 = vsub.f32 %v18_v11, %v89_v17  ;;  %v123_v23 = vand.u32 4294901760, %v122_v16  ;;  %v623_v40 = vpack.c.bf16 %v122_v16, %v115_v15 }
   0x8   :  { %v103_v24 = vsub.f32 %v101_v13, %v102_v19  ;;  %v110_v25 = vsub.f32 %v108_v14, %v109_v20  ;;  %v117_v26 = vsub.f32 %v115_v15, %v116_v21  ;;  %v632_v31 = vpack.c.bf16 %v109_v20, %v102_v19 }
   0x9   :  { %v91_v27 = vand.u32 4294901760, %v90_v22  ;;  %v124_v28 = vsub.f32 %v122_v16, %v123_v23  ;;  %v635_v37 = vpack.c.bf16 %v123_v23, %v116_v21 }
   0xa   :  { %612 = vmatpush3.bf16.msra.mxu1 %v611_v18  ;;  %630 = vmatpush3.bf16.msra.mxu0 %v611_v18  ;;  %v104_v29 = vand.u32 4294901760, %v103_v24  ;;  %v111_v30 = vand.u32 4294901760, %v110_v25  ;;  %v118_v34 = vand.u32 4294901760, %v117_v26 }
   0xb   :  { %v92_v32 = vsub.f32 %v90_v22, %v91_v27  ;;  %613 = vmatprep.subr.bf16.mxu1 %v655_v0  ;;  %631 = vmatprep.subr.bf16.mxu0 %v655_v0  ;;  %v125_v35 = vand.u32 4294901760, %v124_v28 }
   0xc   :  { %v614_v33 = vpack.c.bf16 %v111_v30, %v104_v29 }
   0xd   :  { %v93_v36 = vand.u32 4294901760, %v92_v32  ;;  %583 = vmatmul.mubr.f32.vlgmr.msra.gmra.mrb[0].mxu0 %v91_v27  ;;  %v617_v38 = vpack.c.bf16 %v125_v35, %v118_v34 }
   0xe   :  { %633 = vmatpush3.bf16.msra.mxu0 %v632_v31  ;;  %593 = vmatprep.mubr.msk.f32.mxu0 %vm656_vm1, %v657_v8 }
   0xf   :  { %550 = vmatmul.mubr.f32.vlgmr.msra.gmra.mrb[0].mxu1 %v93_v36  ;;  %634 = vmatprep.subr.bf16.mxu0 %v655_v0 }
  0x10   :  { %615 = vmatpush3.bf16.msra.mxu1 %v614_v33  ;;  %560 = vmatprep.mubr.msk.f32.mxu1 %vm656_vm1, %v657_v8 }
  0x11   :  { %616 = vmatprep.subr.bf16.mxu1 %v655_v0 }
  0x12   :  { %636 = vmatpush3.bf16.msra.mxu0 %v635_v37 }
  0x13   :  { %637 = vmatprep.subr.bf16.mxu0 %v655_v0 }
  0x14   :  { %618 = vmatpush3.bf16.msra.mxu1 %v617_v38 }
  0x15   :  { %619 = vmatprep.subr.bf16.mxu1 %v655_v0  ;;  %594 = vmatmul.mubr.f32.vlgmr.msra.gmra.mrb[0].mxu0 %v89_v17 }
  0x16   :  { %639 = vmatpush3.bf16.msra.mxu0 %v608_v12  ;;  %604 = vmatprep.mubr.msk.f32.mxu0 %vm656_vm1, %v657_v8 }
  0x17   :  { %561 = vmatmul.mubr.f32.vlgmr.msra.gmra.mrb[0].mxu1 %v89_v17  ;;  %640 = vmatprep.subr.bf16.mxu0 %v655_v0 }
  0x18   :  { %621 = vmatpush3.bf16.msra.mxu1 %v620_v39  ;;  %571 = vmatprep.mubr.msk.f32.mxu1 %vm656_vm1, %v657_v8 }
  0x19   :  { %622 = vmatprep.subr.bf16.mxu1 %v655_v0 }
  0x1a   :  { %642 = vmatpush3.bf16.msra.mxu0 %v611_v18 }
  0x1c   :  { %624 = vmatpush3.bf16.msra.mxu1 %v623_v40 }
  0x1d   :  { %605 = vmatmul.mubr.f32.vlgmr.msra.gmra.mrb[0].mxu0 %v89_v17 }
  0x1f   :  { %572 = vmatmul.mubr.f32.vlgmr.msra.gmra.mrb[0].mxu1 %v90_v22 }
  0xf0   :  { %v501_v41 = vpop.f32.mrb[0].mxu0 }
  0xf1   :  { %v606_v42 = vpop.f32.mrb[1].mxu0 }
  0xf2   :  { %v266_v43 = vpop.f32.mrb[0].mxu1 }
  0xf3   :  { %v643_v44 = vadd.f32 %v501_v41, %v266_v43  ;;  %v573_v45 = vpop.f32.mrb[1].mxu1 }
  0xf5   :  { %506 = vst.msk [vmem:[%s712_s2] sm:$0xff] %vm505_vm2, %v643_v44 }

</bundles_post_ra>
